<compile_context>
chip_gen: v5e
topology: v5e:2x2
jax: 0.10.0
libtpu: 0.0.40
codegen_flags: <defaults>
</compile_context>

<pallas_src>
import functools

import jax
import jax.numpy as jnp
from jax.experimental import pallas as pl
from jax.experimental.pallas import tpu as pltpu

_LANES = 128


def _tpu_caps():
    """Best-effort (physical_vmem_bytes, tensorcores_per_device)."""
    vmem = 128 * 1024 * 1024
    cores = 1
    kind = ""
    try:
        kind = jax.devices()[0].device_kind.lower()
    except Exception:
        pass
    if "v7" in kind:                       # 2 TCs / chip, 64 MiB VMEM per TC
        vmem = 64 * 1024 * 1024
        cores = 2
    elif ("v4" in kind and "lite" not in kind) or "v5p" in kind:
        cores = 2                          # megacore: 2 TCs behind one device
    try:
        info = pltpu.get_tpu_info()
        v = int(getattr(info, "vmem_capacity_bytes", 0) or 0)
        if v > 0:
            vmem = v
    except Exception:
        pass
    return vmem, cores


def _choose_tile_n(n, c, itemsize, vmem_limit_bytes, use_mxu):
    """Byte-based tile sizing: biggest row tile that fits the VMEM budget."""
    # Sublane packing factor of the native dtype: 8 (f32), 16 (bf16), 32 (int8/fp8).
    pack = max(8, 32 // max(1, itemsize))
    if n <= pack:
        return n
    # Per-row bytes: double-buffered native logits + ~4 f32-sized elementwise
    # temporaries (f32 copy, exp, iota, select) + the (row,128) MXU dot outputs.
    row_bytes = c * (2 * itemsize + 4 * 4) + (2 * _LANES * 4 if use_mxu else 0) + 16
    budget = int(vmem_limit_bytes * 0.45)    # leave headroom under the scoped limit
    t = budget // max(1, row_bytes)
    if t >= n:
        return n                             # single full-dim block, no masking
    t = max(pack, (t // pack) * pack)        # sublane-packing multiple
    return min(t, n)


def _ce_kernel(x_ref, t_ref, o_ref, *, n_total, tile_n, tiles_per_split,
               mask_rows, use_mxu):
    s = pl.program_id(0)   # TensorCore split ("parallel")
    i = pl.program_id(1)   # reduction step within the split ("arbitrary")

    @pl.when(i == 0)
    def _init():
        o_ref[...] = jnp.zeros_like(o_ref)

    xn = x_ref[...]                                           # (tile_n, C) native dtype
    # Row max is exact in the native dtype (halves traffic for bf16 inputs).
    m = jnp.max(xn, axis=-1, keepdims=True).astype(jnp.float32)   # (tile_n, 1)
    x = xn.astype(jnp.float32)                                # (tile_n, C) f32
    t = t_ref[...]                                            # (tile_n, 1) int32

    p = jnp.exp(x - m)                                        # (tile_n, C)
    col = jax.lax.broadcasted_iota(jnp.int32, x.shape, dimension=1)
    x_tgt = jnp.where(col == t, x, 0.0)                       # one non-zero per row

    if use_mxu:
        # Lane-dense C: row-sums on the (otherwise idle) MXU; f32 operands keep
        # full precision and only the row-max hits the 2-unit XLU.
        ones = jnp.ones((x.shape[-1], _LANES), jnp.float32)
        sum_exp = jnp.dot(p, ones, preferred_element_type=jnp.float32)[:, :1]
        tgt = jnp.dot(x_tgt, ones, preferred_element_type=jnp.float32)[:, :1]
    else:
        # C < 128: MXU would push tile_n/8 rows per f32 pass against a nearly
        # empty weight tile; the XLU lane-reduce is cheaper here.
        sum_exp = jnp.sum(p, axis=-1, keepdims=True)
        tgt = jnp.sum(x_tgt, axis=-1, keepdims=True)

    per_row = m + jnp.log(sum_exp) - tgt                      # (tile_n, 1) stable LSE - tgt

    if mask_rows:
        # Ragged last tile / fully out-of-range extra tile of the second split.
        tile_idx = s * tiles_per_split + i
        row0 = tile_idx * tile_n
        rows = row0 + jax.lax.broadcasted_iota(jnp.int32, (tile_n, 1), 0)
        per_row = jnp.where(rows < n_total, per_row, 0.0)

    # Accumulate into the resident, lane-dense per-split output block.
    o_ref[...] = o_ref[...] + jnp.sum(per_row)


def contrastive_loss(x, target, *, tile_n=None):
    """CrossEntropyLoss(x, target), mean reduction, class-index targets.

    x:      (N, C) float logits (any float dtype; cast to f32 inside the kernel)
    target: (N,)   integer class indices in [0, C)
    returns scalar float32 loss
    """
    n, c = x.shape
    vmem_phys, tc_count = _tpu_caps()
    vmem_limit = min((3 * vmem_phys) // 4, 96 * 1024 * 1024)   # 96 MiB v5e/v6e, 48 MiB v7x
    use_mxu = (c >= _LANES) and (c % _LANES == 0)

    if tile_n is None:
        tile_n = _choose_tile_n(n, c, x.dtype.itemsize, vmem_limit, use_mxu)

    total_tiles = -(-n // tile_n)                       # cdiv
    num_splits = tc_count if total_tiles >= tc_count else 1
    tiles_per_split = -(-total_tiles // num_splits)     # cdiv
    has_extra = num_splits * tiles_per_split != total_tiles
    mask_rows = (n % tile_n != 0) or has_extra          # compile-time decision

    t2d = target.astype(jnp.int32).reshape(n, 1)

    if has_extra:
        def in_map(s, i):
            # Clamp so the extra logical tile of the last split reads valid
            # memory; its rows are masked out inside the kernel.
            return (jnp.minimum(s * tiles_per_split + i, total_tiles - 1), 0)
    else:
        def in_map(s, i):
            return (s * tiles_per_split + i, 0)

    kernel = functools.partial(
        _ce_kernel, n_total=n, tile_n=tile_n, tiles_per_split=tiles_per_split,
        mask_rows=mask_rows, use_mxu=use_mxu)

    out = pl.pallas_call(
        kernel,
        out_shape=jax.ShapeDtypeStruct((1, _LANES * num_splits), jnp.float32),
        grid=(num_splits, tiles_per_split),
        in_specs=[
            pl.BlockSpec((tile_n, c), in_map),   # logits, native dtype (no wrapper cast)
            pl.BlockSpec((tile_n, 1), in_map),   # targets
        ],
        out_specs=pl.BlockSpec((1, _LANES), lambda s, i: (0, s)),
        compiler_params=pltpu.CompilerParams(
            dimension_semantics=("parallel", "arbitrary"),
            vmem_limit_bytes=vmem_limit,
        ),
    )(x, t2d)

    per_split = out.reshape(num_splits, _LANES)[:, 0]
    return jnp.sum(per_split) / jnp.float32(n)


if __name__ == "__main__":
    def ref_loss(xx, tt):
        logp = jax.nn.log_softmax(xx.astype(jnp.float32), axis=-1)
        return -jnp.mean(logp[jnp.arange(xx.shape[0]), tt])

    def check(got, want):
        assert jnp.allclose(got, want, atol=1e-4, rtol=1e-4), (got, want)

    # --- small default-path shape (single tile, single split, XLU reductions) ---
    kx, kt = jax.random.split(jax.random.PRNGKey(0))
    N, C = 8, 32
    x = jax.random.normal(kx, (N, C), dtype=jnp.float32)
    target = jax.random.randint(kt, (N,), 0, C, dtype=jnp.int32)
    loss = contrastive_loss(x, target)
    jax.block_until_ready(loss)
    check(loss, ref_loss(x, target))

    # --- multi-tile path: ragged last tile + accumulation across grid steps ---
    kx2, kt2 = jax.random.split(jax.random.PRNGKey(1))
    N2, C2 = 20, 32
    x2 = jax.random.normal(kx2, (N2, C2), dtype=jnp.float32)
    t2 = jax.random.randint(kt2, (N2,), 0, C2, dtype=jnp.int32)
    loss2 = contrastive_loss(x2, t2, tile_n=8)
    jax.block_until_ready(loss2)
    check(loss2, ref_loss(x2, t2))

    # --- lane-dense C: exercises the MXU row-sum path + ragged masking ---
    kx3, kt3 = jax.random.split(jax.random.PRNGKey(2))
    N3, C3 = 24, 256
    x3 = jax.random.normal(kx3, (N3, C3), dtype=jnp.float32)
    t3 = jax.random.randint(kt3, (N3,), 0, C3, dtype=jnp.int32)
    loss3 = contrastive_loss(x3, t3, tile_n=16)
    jax.block_until_ready(loss3)
    check(loss3, ref_loss(x3, t3))

    print("KERNEL_OK")
</pallas_src>

<mosaic_0001>
module attributes {stable_mosaic.version = 11 : i64} {
  func.func @_ce_kernel(%arg0: i32, %arg1: i32, %arg2: memref<8x32xf32, #tpu.memory_space<vmem>>, %arg3: memref<8x1xi32, #tpu.memory_space<vmem>>, %arg4: memref<1x128xf32, #tpu.memory_space<vmem>>) attributes {dimension_semantics = [#tpu.dimension_semantics<parallel>, #tpu.dimension_semantics<arbitrary>], iteration_bounds = array<i64: 1, 1>, scalar_prefetch = 0 : i64, scratch_operands = 0 : i64, tpu.core_type = #tpu.core_type<tc>, window_params = [{transform_indices = @transform_0, window_bounds = array<i64: 8, 32>}, {transform_indices = @transform_1, window_bounds = array<i64: 8, 1>}, {transform_indices = @transform_2, window_bounds = array<i64: 1, 128>}]} {
    %c0_i32 = arith.constant 0 : i32
    %0 = arith.cmpi eq, %arg1, %c0_i32 : i32
    %1 = arith.extui %0 : i1 to i32
    %c0_i32_0 = arith.constant 0 : i32
    %2 = arith.cmpi ne, %1, %c0_i32_0 : i32
    scf.if %2 {
      %cst_12 = arith.constant 0.000000e+00 : f32
      %30 = vector.broadcast %cst_12 : f32 to vector<1x128xf32>
      %c0_13 = arith.constant 0 : index
      %c0_14 = arith.constant 0 : index
      %31 = vector.load %arg4[%c0_13, %c0_14] : memref<1x128xf32, #tpu.memory_space<vmem>>, vector<1x128xf32>
      tpu.vector_store %arg4[%c0_13, %c0_14], %30 {strides = array<i32>} : memref<1x128xf32, #tpu.memory_space<vmem>>, vector<1x128xf32>,
    } else {
    }
    %c0 = arith.constant 0 : index
    %c0_1 = arith.constant 0 : index
    %3 = vector.load %arg2[%c0, %c0_1] : memref<8x32xf32, #tpu.memory_space<vmem>>, vector<8x32xf32>
    %cst = arith.constant dense<0xFF800000> : vector<8xf32>
    %4 = vector.multi_reduction <maximumf>, %3, %cst [1] : vector<8x32xf32> to vector<8xf32>
    %5 = vector.shape_cast %4 : vector<8xf32> to vector<8x1xf32>
    %c0_2 = arith.constant 0 : index
    %c0_3 = arith.constant 0 : index
    %6 = vector.load %arg3[%c0_2, %c0_3] : memref<8x1xi32, #tpu.memory_space<vmem>>, vector<8x1xi32>
    %7 = vector.broadcast %5 : vector<8x1xf32> to vector<8x32xf32>
    %8 = arith.subf %3, %7 : vector<8x32xf32>
    %9 = math.exp %8 : vector<8x32xf32>
    %10 = tpu.iota {dimensions = array<i32: 1>} : vector<8x32xi32>
    %11 = vector.broadcast %6 : vector<8x1xi32> to vector<8x32xi32>
    %12 = arith.cmpi eq, %10, %11 : vector<8x32xi32>
    %cst_4 = arith.constant 0.000000e+00 : f32
    %13 = vector.broadcast %cst_4 : f32 to vector<8x32xf32>
    %14 = arith.select %12, %3, %13 : vector<8x32xi1>, vector<8x32xf32>
    %cst_5 = arith.constant dense<0.000000e+00> : vector<8xf32>
    %15 = vector.multi_reduction <add>, %9, %cst_5 [1] : vector<8x32xf32> to vector<8xf32>
    %16 = vector.shape_cast %15 : vector<8xf32> to vector<8x1xf32>
    %cst_6 = arith.constant dense<0.000000e+00> : vector<8xf32>
    %17 = vector.multi_reduction <add>, %14, %cst_6 [1] : vector<8x32xf32> to vector<8xf32>
    %18 = vector.shape_cast %17 : vector<8xf32> to vector<8x1xf32>
    %19 = math.log %16 : vector<8x1xf32>
    %20 = arith.addf %5, %19 : vector<8x1xf32>
    %21 = arith.subf %20, %18 : vector<8x1xf32>
    %c0_7 = arith.constant 0 : index
    %c0_8 = arith.constant 0 : index
    %22 = vector.load %arg4[%c0_7, %c0_8] : memref<1x128xf32, #tpu.memory_space<vmem>>, vector<1x128xf32>
    %23 = vector.shape_cast %21 : vector<8x1xf32> to vector<1x8x1xf32>
    %cst_9 = arith.constant dense<0.000000e+00> : vector<1xf32>
    %24 = vector.multi_reduction <add>, %23, %cst_9 [1, 2] : vector<1x8x1xf32> to vector<1xf32>
    %25 = vector.shape_cast %24 : vector<1xf32> to vector<1x1x1xf32>
    %26 = vector.extract %25[0, 0, 0] : f32 from vector<1x1x1xf32>
    %27 = vector.broadcast %26 : f32 to vector<1x128xf32>
    %28 = arith.addf %22, %27 : vector<1x128xf32>
    %c0_10 = arith.constant 0 : index
    %c0_11 = arith.constant 0 : index
    %29 = vector.load %arg4[%c0_10, %c0_11] : memref<1x128xf32, #tpu.memory_space<vmem>>, vector<1x128xf32>
    tpu.vector_store %arg4[%c0_10, %c0_11], %28 {strides = array<i32>} : memref<1x128xf32, #tpu.memory_space<vmem>>, vector<1x128xf32>,
    return
  }
  func.func @transform_0(%arg0: i32, %arg1: i32) -> (i32, i32) {
    %c1_i32 = arith.constant 1 : i32
    %0 = arith.muli %arg0, %c1_i32 : i32
    %1 = arith.addi %0, %arg1 : i32
    %c0_i32 = arith.constant 0 : i32
    %c0_i32_0 = arith.constant 0 : i32
    return %1, %c0_i32 : i32, i32
  }
  func.func @transform_1(%arg0: i32, %arg1: i32) -> (i32, i32) {
    %c1_i32 = arith.constant 1 : i32
    %0 = arith.muli %arg0, %c1_i32 : i32
    %1 = arith.addi %0, %arg1 : i32
    %c0_i32 = arith.constant 0 : i32
    %c0_i32_0 = arith.constant 0 : i32
    return %1, %c0_i32 : i32, i32
  }
  func.func @transform_2(%arg0: i32, %arg1: i32) -> (i32, i32) {
    %c0_i32 = arith.constant 0 : i32
    %c0_i32_0 = arith.constant 0 : i32
    return %c0_i32, %arg0 : i32, i32
  }
}

</mosaic_0001>

<bundles_post_ra>
// kernel: tpu_custom_call.1
= control target key start
LH: loop header
LB: loop body
LE: loop exit
PB: predicated region body
PF: predicated region fallthrough
CT: control target
= control target key end

     0   :  { %vm52_vm0 = vcmask 261120   ;;  %s186_s0 = inlined_call_operand.vmem [shape: f32[8,32], index: 0, kind: input, shape index: {}]   ;;  %s187_s1 = inlined_call_operand.vmem [shape: s32[8,1], index: 1, kind: input, shape index: {}]   ;;  %s188_s2 = inlined_call_operand.hbm [shape: f32[1,128], index: 2, kind: output, shape index: {}]  }
   0x1   :  { %v51_v0 = vld [vmem:[%s186_s0] sm:$0xff] }
   0x2   :  { %7 = vsyncpa [#allocation3], 0  ;;  %v53_v1 = vsel %vm52_vm0, %v51_v0, -inf  ;;  %v156_v2 = vmov 0   ;;  %v56_v3 = vld [vmem:[%s187_s1] sm:$0xff]  ;;  %v60_v9 = vlaneseq  ;;  %vm78_vm2 = vcmask 7168  }
   0x3   :  { %125 = vset.pattern.permute.xlu0 %v156_v2  ;;  %v157_v21 = vmov 0.0   ;;  %s158_s0 = smov [#allocation2]   ;;  %s99_s15 = sshll.u32 %s188_s2, 4  ;;  %s100_s15 = int_to_ptr.hbm [resolvable:$true] %s99_s15 }
   0x4   :  { %54 = vmax.xlane.f32.xlu0 %v53_v1  ;;  %v61_v10 = vand.u32 127, %v60_v9  ;;  %50 = vst [vmem:[#allocation2] sm:$0x1] %v157_v21  ;;  %s97_s1 = sshll.u32 %s158_s0, 4  ;;  %s98_s1 = int_to_ptr.vmem [resolvable:$true] %s97_s1 }
   0xb   :  { %v77_v29 = vld [vmem:[#allocation2] sm:$0x1] }
  0x18   :  { %63 = vperm.xlu0 %125, %v56_v3  }
  0x77   :  { %v55_v4 = vpop.xlane.xlu0 %54 }
  0x78   :  { %v57_v5 = vsub.f32 %v51_v0, %v55_v4 }
  0x7a   :  { %v58_v6 = vmul.f32 1.442695, %v57_v5 }
  0x7c   :  { %126 = vpow2.f32 %v58_v6 }
  0x82   :  { %v127_v7 = vpop.eup %126 }
  0x83   :  { %v67_v8 = vsel %vm52_vm0, %v127_v7, 0.0 }
  0x84   :  { %68 = vadd.xlane.f32.xlu1 %v67_v8 }
  0x8a   :  { %v64_v11 = vpop.permute.xlu0 %63 }
  0x8b   :  { %vm65_vm1 = vcmp.eq.s32.totalorder %v61_v10, %v64_v11 }
  0x8c   :  { %v66_v12 = vsel %vm65_vm1, %v51_v0, 0.0 }
  0x8d   :  { %v70_v13 = vsel %vm52_vm0, %v66_v12, 0.0 }
  0x8e   :  { %71 = vadd.xlane.f32.xlu1 %v70_v13 }
  0xf7   :  { %v69_v14 = vpop.xlane.xlu1 %68 }
  0xf8   :  { %128 = vlog2.f32 %v69_v14 }
  0xfe   :  { %v129_v15 = vpop.eup %128 }
  0xff   :  { %v74_v16 = vmul.f32 0.6931472, %v129_v15 }
 0x101   :  { %v75_v17 = vadd.f32 %v74_v16, %v55_v4  ;;  %v72_v18 = vpop.xlane.xlu1 %71 }
 0x103   :  { %v76_v19 = vsub.f32 %v75_v17, %v72_v18 }
 0x105   :  { %v79_v20 = vsel %vm78_vm2, %v76_v19, 0.0 }
 0x106   :  { %80 = vadd.xlane.f32.xlu2 %v79_v20 }
 0x179   :  { %v81_v22 = vpop.xlane.xlu2 %80 }
 0x17a   :  { %v82_v23 = vrot.slane %v81_v22, 4 }
 0x17c   :  { %v83_v24 = vadd.f32 %v82_v23, %v81_v22 }
 0x17e   :  { %v84_v25 = vrot.slane %v83_v24, 2 }
 0x180   :  { %v85_v26 = vadd.f32 %v84_v25, %v83_v24 }
 0x182   :  { %v86_v27 = vrot.slane %v85_v26, 1 }
 0x184   :  { %v87_v28 = vadd.f32 %v86_v27, %v85_v26 }
 0x186   :  { %120 = vpush %v87_v28 }
 0x1b7   :  { %s121_s16 = spop %120 }
 0x1b8   :  { %v89_v30 = vstv %s121_s16 }
 0x1b9   :  { %v90_v31 = vadd.f32 %v89_v30, %v77_v29 }
 0x1bb   :  { %91 = vst [vmem:[#allocation2] sm:$0x1] %v90_v31 }
 0x1bc   :  { %102 = dma.vmem_to_hbm [thread:$0]  %s98_s1, 16, %s100_s15, [#allocation3]  }
 0x1bd   :  { %154 = dma.done.wait [#allocation3], 16  }
 0x1be   :  { %155 = vsyncadd [#allocation3], 4294967280 }
 0x1bf   :  { %107 = vsyncpa [#allocation3], 1 }

</bundles_post_ra>
